<compile_context>
chip_gen: v7x
topology: tpu7x:2x2x1
jax: 0.10.0
libtpu: 0.0.40
codegen_flags: <defaults>
</compile_context>

<pallas_src>
from itertools import combinations

import jax
import jax.numpy as jnp
import numpy as np
from jax.experimental import pallas as pl
from jax.experimental.pallas import tpu as pltpu


def _dense_rbs_kernel(ut_ref, x_ref, o_ref):
    """ut_ref: (L, N, N) pre-transposed gate unitaries U_g^T (VMEM-resident);
    x_ref / o_ref: (TM, N) tile of flattened state rows."""
    x = x_ref[...]                                  # (TM, N) float32
    num_gates = ut_ref.shape[0]                     # static

    def apply_gate(g, acc):
        # acc @ U_g^T  ==  einsum('jk,rk->rj', U_g, acc)   (MXU, natural NN form)
        return jnp.dot(
            acc, ut_ref[g],
            preferred_element_type=jnp.float32,
            precision=jax.lax.Precision.HIGHEST,
        )

    x = jax.lax.fori_loop(0, num_gates, apply_gate, x, unroll=True)
    o_ref[...] = x


def _pick_tile_rows(m, n, l, dtype_bytes=4, vmem_budget_bytes=16 * 1024 * 1024):
    """Largest sublane-aligned row tile keeping double-buffered in/out blocks
    plus the resident (L, N, N) unitary stack under a conservative VMEM budget
    (safe for 64 MiB v7x as well as 128 MiB v5e/v6e parts)."""
    n_padded = max(n, 128)                          # lane padding of a block
    unitary_bytes = l * max(n, 8) * n_padded * dtype_bytes
    row_bytes = n_padded * dtype_bytes
    tm = (vmem_budget_bytes - unitary_bytes) // (4 * row_bytes)
    tm = max(8, tm)
    if tm >= m:
        return m                          # one block spans the full row extent
    return max(8, (tm // 8) * 8)          # keep sublane dim 8-aligned


def dense_rbs_state_vector_3d(input_state, angles, u0_stack, u1_stack, u2_stack):
    """input_state: (B, N, N); angles: (L,); u*_stack: (L, N, N).
    Returns the state after sequentially applying every RBS gate."""
    x = input_state.astype(jnp.float32)            # mirrors `input_state.float()`
    B, N, _ = x.shape
    L = angles.shape[0]

    # Parameter-only work (independent of the batch): build each gate unitary
    # once and pre-transpose it, instead of shipping U0/U1/U2 (3x the data)
    # into the kernel and transposing there.
    cos = jnp.cos(angles)[:, None, None]
    sin = jnp.sin(angles)[:, None, None]
    u_stack = (u0_stack * cos + u1_stack * sin + u2_stack).astype(jnp.float32)
    ut_stack = jnp.swapaxes(u_stack, 1, 2)         # (L, N, N), each is U_g^T

    M = B * N
    x2 = x.reshape(M, N)                           # contiguous, free reshape
    TM = _pick_tile_rows(M, N, L)

    out = pl.pallas_call(
        _dense_rbs_kernel,
        out_shape=jax.ShapeDtypeStruct((M, N), jnp.float32),
        grid_spec=pltpu.PrefetchScalarGridSpec(
            num_scalar_prefetch=0,
            grid=(pl.cdiv(M, TM),),
            in_specs=[
                # Full gate stack, same block every step -> resident in VMEM.
                pl.BlockSpec((L, N, N), lambda m: (0, 0, 0)),
                # One large tile of rows per grid step (boundary blocks masked).
                pl.BlockSpec((TM, N), lambda m: (m, 0)),
            ],
            out_specs=pl.BlockSpec((TM, N), lambda m: (m, 0)),
        ),
        compiler_params=pltpu.CompilerParams(
            dimension_semantics=("parallel",),
        ),
    )(ut_stack, x2)
    return out.reshape(B, N, N)


def rbs_unitaries(n_qubits, k, list_gates):
    """Host-side re-implementation of the QCNN RBS_Unitaries helper: for each
    qubit pair (a, b) returns (U0, U1, U2) with U(theta)=U0*cos+U1*sin+U2 acting
    on the Hamming-weight-k computational basis of n_qubits qubits."""
    basis = list(combinations(range(n_qubits), k))
    index = {s: i for i, s in enumerate(basis)}
    N = len(basis)
    out = {}
    for (a, b) in list_gates:
        u0 = np.zeros((N, N), np.float32)
        u1 = np.zeros((N, N), np.float32)
        u2 = np.zeros((N, N), np.float32)
        for i, s in enumerate(basis):
            has_a, has_b = (a in s), (b in s)
            if has_a != has_b:
                u0[i, i] = 1.0
                swapped = tuple(sorted((set(s) - {a, b}) | ({b} if has_a else {a})))
                u1[i, index[swapped]] = 1.0 if has_a else -1.0
            else:
                u2[i, i] = 1.0
        out[(a, b)] = (u0, u1, u2)
    return out, N


if __name__ == "__main__":
    key = jax.random.PRNGKey(0)

    # Small shapes consistent with the module: n_qubits = I + I + J, N = C(n, k)
    I, J, k = 2, 2, 2                       # n_qubits = 6, N = C(6, 2) = 15
    n_qubits = I + I + J
    list_gates = [(0, 1), (2, 3), (4, 5), (1, 2), (3, 4), (0, 5)]
    B = 2

    unitaries, N = rbs_unitaries(n_qubits, k, list_gates)
    L = len(list_gates)
    u0_stack = jnp.stack([jnp.asarray(unitaries[g][0]) for g in list_gates])
    u1_stack = jnp.stack([jnp.asarray(unitaries[g][1]) for g in list_gates])
    u2_stack = jnp.stack([jnp.asarray(unitaries[g][2]) for g in list_gates])

    k_angles, k_state = jax.random.split(key)
    angles = jax.random.uniform(k_angles, (L,), dtype=jnp.float32)  # torch.rand init
    input_state = jax.random.normal(k_state, (B, N, N), dtype=jnp.float32)

    out = dense_rbs_state_vector_3d(input_state, angles, u0_stack, u1_stack, u2_stack)
    out = jax.block_until_ready(out)

    # Pure-JAX reference: sequential per-gate application (module semantics).
    ref = input_state.astype(jnp.float32)
    for g in range(L):
        U = (u0_stack[g] * jnp.cos(angles[g])
             + u1_stack[g] * jnp.sin(angles[g])
             + u2_stack[g])
        ref = jnp.einsum("jk,bik->bij", U, ref,
                         precision=jax.lax.Precision.HIGHEST)

    assert out.shape == (B, N, N)
    assert jnp.allclose(out, ref, atol=1e-4, rtol=1e-4), \
        float(jnp.max(jnp.abs(out - ref)))

    print("KERNEL_OK")
</pallas_src>

<mosaic_0001>
module attributes {stable_mosaic.version = 11 : i64} {
  func.func @_dense_rbs_kernel(%arg0: i32, %arg1: memref<6x15x15xf32, #tpu.memory_space<vmem>>, %arg2: memref<30x15xf32, #tpu.memory_space<vmem>>, %arg3: memref<30x15xf32, #tpu.memory_space<vmem>>) attributes {dimension_semantics = [#tpu.dimension_semantics<parallel>], iteration_bounds = array<i64: 1>, scalar_prefetch = 0 : i64, scratch_operands = 0 : i64, tpu.core_type = #tpu.core_type<tc>, window_params = [{pipeline_mode = #tpu.pipeline_mode<synchronous>, transform_indices = @transform_0, window_bounds = array<i64: 6, 15, 15>}, {transform_indices = @transform_1, window_bounds = array<i64: 30, 15>}, {transform_indices = @transform_2, window_bounds = array<i64: 30, 15>}]} {
    %c0 = arith.constant 0 : index
    %c0_0 = arith.constant 0 : index
    %0 = vector.load %arg2[%c0, %c0_0] : memref<30x15xf32, #tpu.memory_space<vmem>>, vector<30x15xf32>
    %c0_i32 = arith.constant 0 : i32
    %1 = arith.index_cast %c0_i32 : i32 to index
    %c0_1 = arith.constant 0 : index
    %c0_2 = arith.constant 0 : index
    %2 = vector.load %arg1[%1, %c0_1, %c0_2] : memref<6x15x15xf32, #tpu.memory_space<vmem>>, vector<1x15x15xf32>
    %3 = vector.shape_cast %2 : vector<1x15x15xf32> to vector<15x15xf32>
    %cst = arith.constant dense<0.000000e+00> : vector<30x15xf32>
    %4 = tpu.matmul %0, %3, %cst {dimension_numbers = #tpu.dot_dimension_numbers<[1], [0], [0], [1], [0, 0, 1, 1], [], []>, precision = #tpu.contract_precision<fp32>} : vector<30x15xf32>, vector<15x15xf32>, vector<30x15xf32> -> vector<30x15xf32>
    %c1_i32 = arith.constant 1 : i32
    %5 = arith.index_cast %c1_i32 : i32 to index
    %c0_3 = arith.constant 0 : index
    %c0_4 = arith.constant 0 : index
    %6 = vector.load %arg1[%5, %c0_3, %c0_4] : memref<6x15x15xf32, #tpu.memory_space<vmem>>, vector<1x15x15xf32>
    %7 = vector.shape_cast %6 : vector<1x15x15xf32> to vector<15x15xf32>
    %cst_5 = arith.constant dense<0.000000e+00> : vector<30x15xf32>
    %8 = tpu.matmul %4, %7, %cst_5 {dimension_numbers = #tpu.dot_dimension_numbers<[1], [0], [0], [1], [0, 0, 1, 1], [], []>, precision = #tpu.contract_precision<fp32>} : vector<30x15xf32>, vector<15x15xf32>, vector<30x15xf32> -> vector<30x15xf32>
    %c2_i32 = arith.constant 2 : i32
    %9 = arith.index_cast %c2_i32 : i32 to index
    %c0_6 = arith.constant 0 : index
    %c0_7 = arith.constant 0 : index
    %10 = vector.load %arg1[%9, %c0_6, %c0_7] : memref<6x15x15xf32, #tpu.memory_space<vmem>>, vector<1x15x15xf32>
    %11 = vector.shape_cast %10 : vector<1x15x15xf32> to vector<15x15xf32>
    %cst_8 = arith.constant dense<0.000000e+00> : vector<30x15xf32>
    %12 = tpu.matmul %8, %11, %cst_8 {dimension_numbers = #tpu.dot_dimension_numbers<[1], [0], [0], [1], [0, 0, 1, 1], [], []>, precision = #tpu.contract_precision<fp32>} : vector<30x15xf32>, vector<15x15xf32>, vector<30x15xf32> -> vector<30x15xf32>
    %c3_i32 = arith.constant 3 : i32
    %13 = arith.index_cast %c3_i32 : i32 to index
    %c0_9 = arith.constant 0 : index
    %c0_10 = arith.constant 0 : index
    %14 = vector.load %arg1[%13, %c0_9, %c0_10] : memref<6x15x15xf32, #tpu.memory_space<vmem>>, vector<1x15x15xf32>
    %15 = vector.shape_cast %14 : vector<1x15x15xf32> to vector<15x15xf32>
    %cst_11 = arith.constant dense<0.000000e+00> : vector<30x15xf32>
    %16 = tpu.matmul %12, %15, %cst_11 {dimension_numbers = #tpu.dot_dimension_numbers<[1], [0], [0], [1], [0, 0, 1, 1], [], []>, precision = #tpu.contract_precision<fp32>} : vector<30x15xf32>, vector<15x15xf32>, vector<30x15xf32> -> vector<30x15xf32>
    %c4_i32 = arith.constant 4 : i32
    %17 = arith.index_cast %c4_i32 : i32 to index
    %c0_12 = arith.constant 0 : index
    %c0_13 = arith.constant 0 : index
    %18 = vector.load %arg1[%17, %c0_12, %c0_13] : memref<6x15x15xf32, #tpu.memory_space<vmem>>, vector<1x15x15xf32>
    %19 = vector.shape_cast %18 : vector<1x15x15xf32> to vector<15x15xf32>
    %cst_14 = arith.constant dense<0.000000e+00> : vector<30x15xf32>
    %20 = tpu.matmul %16, %19, %cst_14 {dimension_numbers = #tpu.dot_dimension_numbers<[1], [0], [0], [1], [0, 0, 1, 1], [], []>, precision = #tpu.contract_precision<fp32>} : vector<30x15xf32>, vector<15x15xf32>, vector<30x15xf32> -> vector<30x15xf32>
    %c5_i32 = arith.constant 5 : i32
    %21 = arith.index_cast %c5_i32 : i32 to index
    %c0_15 = arith.constant 0 : index
    %c0_16 = arith.constant 0 : index
    %22 = vector.load %arg1[%21, %c0_15, %c0_16] : memref<6x15x15xf32, #tpu.memory_space<vmem>>, vector<1x15x15xf32>
    %23 = vector.shape_cast %22 : vector<1x15x15xf32> to vector<15x15xf32>
    %cst_17 = arith.constant dense<0.000000e+00> : vector<30x15xf32>
    %24 = tpu.matmul %20, %23, %cst_17 {dimension_numbers = #tpu.dot_dimension_numbers<[1], [0], [0], [1], [0, 0, 1, 1], [], []>, precision = #tpu.contract_precision<fp32>} : vector<30x15xf32>, vector<15x15xf32>, vector<30x15xf32> -> vector<30x15xf32>
    %c6_i32 = arith.constant 6 : i32
    %c0_18 = arith.constant 0 : index
    %c0_19 = arith.constant 0 : index
    %25 = vector.load %arg3[%c0_18, %c0_19] : memref<30x15xf32, #tpu.memory_space<vmem>>, vector<30x15xf32>
    tpu.vector_store %arg3[%c0_18, %c0_19], %24 {strides = array<i32>} : memref<30x15xf32, #tpu.memory_space<vmem>>, vector<30x15xf32>,
    return
  }
  func.func @transform_0(%arg0: i32) -> (i32, i32, i32) {
    %c0_i32 = arith.constant 0 : i32
    %c0_i32_0 = arith.constant 0 : i32
    %c0_i32_1 = arith.constant 0 : i32
    %c0_i32_2 = arith.constant 0 : i32
    return %c0_i32, %c0_i32_0, %c0_i32_1 : i32, i32, i32
  }
  func.func @transform_1(%arg0: i32) -> (i32, i32) {
    %c0_i32 = arith.constant 0 : i32
    %c0_i32_0 = arith.constant 0 : i32
    return %arg0, %c0_i32 : i32, i32
  }
  func.func @transform_2(%arg0: i32) -> (i32, i32) {
    %c0_i32 = arith.constant 0 : i32
    %c0_i32_0 = arith.constant 0 : i32
    return %arg0, %c0_i32 : i32, i32
  }
}

</mosaic_0001>

<bundles_post_ra>
// kernel: tpu_custom_call.1
= control target key start
LH: loop header
LB: loop body
LE: loop exit
PB: predicated region body
PF: predicated region fallthrough
CT: control target
= control target key end

     0   :  { %7 = vsyncpa [#allocation3], 0  ;;  %s4543_s9 = smov [#allocation2]   ;;  %s4688_s0 = inlined_call_operand.hbm [shape: f32[6,15,15], index: 0, kind: input, shape index: {}]   ;;  %s4689_s1 = inlined_call_operand.vmem [shape: f32[30,15], index: 1, kind: input, shape index: {}]   ;;  %s4690_s2 = inlined_call_operand.vmem [shape: f32[30,15], index: 2, kind: output, shape index: {}]  }
   0x1   :  { %s13_s10 = sshll.u32 %s4543_s9, 4  ;;  %s4519_s13 = scalar_lea.hbm %s4688_s0, 1536  ;;  %s14_s10 = int_to_ptr.vmem [resolvable:$true] %s13_s10 }
   0x2   :  { %p4520_p0 = scmp.ne.s32.totalorder %s4688_s0, %s4519_s13  ;;  %p4523_p1 = scmp.lt.u32.totalorder %s4519_s13, %s4688_s0 }
   0x4   :  { %p4525_p2 = pnand %p4523_p1, %p4520_p0 }
   0x6   :  { %4528 = shalt.err (!%p4525_p2)
}
   0x7   :  { %s4529_s18 = scalar_lea.vmem %s14_s10, 1536  ;;  %p4534_p4 = scmp.lt.s32.totalorder %s14_s10, %s14_s10 }
   0x8   :  { %p4530_p3 = scmp.ne.s32.totalorder %s14_s10, %s4529_s18  ;;  %p4535_p5 = scmp.lt.s32.totalorder %s4529_s18, %s4529_s18 }
   0xa   :  { %p4536_p6 = por %p4535_p5, %p4534_p4 }
   0xc   :  { %p4537_p7 = pnand %p4536_p6, %p4530_p3 }
   0xe   :  { %4540 = shalt.err (!%p4537_p7)
}
   0xf   :  { %s4544_s19 = smov 128   ;;  %s4545_s20 = smov 8  }
  0x10   :  { %19 = dma.hbm_to_vmem [thread:$0]  %s4688_s0, 1536, %s14_s10, [#allocation3], %s4544_s19, %s4544_s19, %s4545_s20  }
  0x11   :  { %4541 = dma.done.wait [#allocation3], 1536  }
  0x12   :  { %4542 = vsyncadd [#allocation3], 4294965760  ;;  %vm44_vm0 = vcmask 1046528   ;;  %vm31_vm1 = vcmask 121856   ;;  %v29_v0 = vld [vmem:[#allocation2] sm:$0xff]  ;;  %v26_v6 = vld [vmem:[%s4689_s1 + $0x8] sm:$0xff] }
  0x13   :  { %v30_v1 = vld [vmem:[#allocation2 + $0x8] sm:$0x7f]  ;;  %v25_v2 = vld [vmem:[%s4689_s1] sm:$0xff]  ;;  %v49_v4 = vand.u32 4294901760, %v29_v0  ;;  %v27_v7 = vld [vmem:[%s4689_s1 + $0x10] sm:$0xff]  ;;  %v36_v10 = vsel %vm31_vm1, %v26_v6, 0 }
  0x14   :  { %v46_v3 = vsel %vm44_vm0, %v30_v1, 0  ;;  %v33_v5 = vsel %vm31_vm1, %v25_v2, 0  ;;  %v39_v11 = vsel %vm31_vm1, %v27_v7, 0  ;;  %v28_v12 = vld [vmem:[%s4689_s1 + $0x18] sm:$0x3f]  ;;  %v4591_v13 = vand.u32 4294901760, %v36_v10 }
  0x15   :  { %v52_v8 = vand.u32 4294901760, %v46_v3  ;;  %v4584_v9 = vand.u32 4294901760, %v33_v5  ;;  %v157_v14 = vsub.f32 %v29_v0, %v49_v4  ;;  %v4593_v15 = vand.u32 4294901760, %v39_v11  ;;  %v638_v45 = vld [vmem:[#allocation2 + $0x18] sm:$0x7f]  ;;  %v637_v46 = vld [vmem:[#allocation2 + $0x10] sm:$0xff] }
  0x16   :  { %v42_v16 = vsel %vm31_vm1, %v28_v12, 0  ;;  %v126_v21 = vsub.f32 %v36_v10, %v4591_v13  ;;  %v652_v47 = vsel %vm44_vm0, %v638_v45, 0  ;;  %v655_v48 = vand.u32 4294901760, %v637_v46 }
  0x17   :  { %v4252_v17 = vpack.c.bf16 %v52_v8, %v49_v4  ;;  %v116_v18 = vsub.f32 %v33_v5, %v4584_v9  ;;  %v164_v19 = vsub.f32 %v46_v3, %v52_v8  ;;  %v145_v20 = vand.u32 4294901760, %v42_v16 }
  0x18   :  { %v158_v22 = vand.u32 4294901760, %v157_v14  ;;  %v136_v23 = vsub.f32 %v39_v11, %v4593_v15  ;;  %v127_v27 = vand.u32 4294901760, %v126_v21  ;;  %v658_v49 = vand.u32 4294901760, %v652_v47 }
  0x19   :  { %4253 = vmatprep.subr.bf16.mxu0 %v4252_v17  ;;  %v117_v24 = vand.u32 4294901760, %v116_v18  ;;  %v165_v25 = vand.u32 4294901760, %v164_v19  ;;  %v146_v26 = vsub.f32 %v42_v16, %v145_v20  ;;  %v4260_v42 = vpack.c.bf16 %v164_v19, %v157_v14 }
  0x1a   :  { %4255 = vmatpush3.bf16.msra.mxu0 %v4252_v17  ;;  %v159_v28 = vsub.f32 %v157_v14, %v158_v22  ;;  %v137_v29 = vand.u32 4294901760, %v136_v23  ;;  %v128_v33 = vsub.f32 %v126_v21, %v127_v27  ;;  %v4609_v50 = vpack.c.bf16 %v658_v49, %v655_v48 }
  0x1b   :  { %v118_v30 = vsub.f32 %v116_v18, %v117_v24  ;;  %v166_v31 = vsub.f32 %v164_v19, %v165_v25  ;;  %v147_v32 = vand.u32 4294901760, %v146_v26  ;;  %v4268_v44 = vpack.c.bf16 %v165_v25, %v158_v22 }
  0x1c   :  { %v160_v34 = vand.u32 4294901760, %v159_v28  ;;  %v138_v35 = vsub.f32 %v136_v23, %v137_v29  ;;  %v129_v39 = vand.u32 4294901760, %v128_v33  ;;  %v763_v51 = vsub.f32 %v637_v46, %v655_v48  ;;  %4277 = vmatprep.subr.bf16.mxu1 %v4609_v50 }
  0x1d   :  { %v119_v36 = vand.u32 4294901760, %v118_v30  ;;  %v167_v37 = vand.u32 4294901760, %v166_v31  ;;  %v148_v38 = vsub.f32 %v146_v26, %v147_v32  ;;  %v770_v52 = vsub.f32 %v652_v47, %v658_v49  ;;  %4279 = vmatpush3.bf16.msra.mxu1 %v4609_v50 }
  0x1e   :  { %v139_v40 = vand.u32 4294901760, %v138_v35  ;;  %v764_v53 = vand.u32 4294901760, %v763_v51  ;;  %vm3669_vm2 = vcmask 119808  }
  0x1f   :  { %3896 = vmatprep.mubr.f32.mxu0 %v119_v36  ;;  %v4256_v41 = vpack.c.bf16 %v167_v37, %v160_v34  ;;  %v149_v43 = vand.u32 4294901760, %v148_v38  ;;  %v771_v54 = vand.u32 4294901760, %v770_v52  ;;  %v4284_v60 = vpack.c.bf16 %v770_v52, %v763_v51 }
  0x20   :  { %3897 = vmatmul.mubr.f32.vlgmr.msra.gmra.mrb[0].mxu0 %v129_v39  ;;  %v765_v55 = vsub.f32 %v763_v51, %v764_v53 }
  0x21   :  { %4257 = vmatprep.subr.bf16.mxu0 %v4256_v41  ;;  %3899 = vmatprep.mubr.f32.mxu0 %v139_v40  ;;  %v772_v56 = vsub.f32 %v770_v52, %v771_v54  ;;  %v4292_v61 = vpack.c.bf16 %v771_v54, %v764_v53 }
  0x22   :  { %4259 = vmatpush3.bf16.msra.mxu0 %v4256_v41  ;;  %v766_v57 = vand.u32 4294901760, %v765_v55 }
  0x23   :  { %4261 = vmatprep.subr.bf16.mxu0 %v4260_v42  ;;  %v773_v58 = vand.u32 4294901760, %v772_v56 }
  0x24   :  { %3900 = vmatmul.mubr.f32.gmra.mrb[2].mxu0 %v149_v43 }
  0x25   :  { %3906 = vmatprep.mubr.f32.mxu0 %v4584_v9  ;;  %v4280_v59 = vpack.c.bf16 %v773_v58, %v766_v57 }
  0x27   :  { %4281 = vmatprep.subr.bf16.mxu1 %v4280_v59 }
  0x28   :  { %3907 = vmatmul.mubr.f32.vlgmr.msra.gmra.mrb[0].mxu0 %v4591_v13 }
  0x29   :  { %4263 = vmatpush3.bf16.msra.mxu0 %v4260_v42  ;;  %3909 = vmatprep.mubr.f32.mxu0 %v4593_v15 }
  0x2a   :  { %4265 = vmatprep.subr.bf16.mxu0 %v4252_v17 }
  0x2c   :  { %3910 = vmatmul.mubr.f32.gmra.mrb[2].mxu0 %v145_v20 }
  0x2d   :  { %3916 = vmatprep.mubr.f32.mxu0 %v116_v18 }
  0x30   :  { %3917 = vmatmul.mubr.f32.vlgmr.msra.gmra.mrb[0].mxu0 %v126_v21 }
  0x31   :  { %4267 = vmatpush3.bf16.msra.mxu0 %v4252_v17  ;;  %3919 = vmatprep.mubr.f32.mxu0 %v136_v23 }
  0x32   :  { %4269 = vmatprep.subr.bf16.mxu0 %v4268_v44 }
  0x34   :  { %3920 = vmatmul.mubr.f32.gmra.mrb[2].mxu0 %v146_v26  ;;  %v1244_v26 = vld [vmem:[#allocation2 + $0x28] sm:$0x7f] }
  0x35   :  { %3926 = vmatprep.mubr.f32.mxu0 %v117_v24  ;;  %v1258_v28 = vsel %vm44_vm0, %v1244_v26, 0 }
  0x36   :  { %v1264_v30 = vand.u32 4294901760, %v1258_v28 }
  0x38   :  { %3927 = vmatmul.mubr.f32.vlgmr.msra.gmra.mrb[0].mxu0 %v127_v27  ;;  %v1243_v27 = vld [vmem:[#allocation2 + $0x20] sm:$0xff]  ;;  %v1376_v33 = vsub.f32 %v1258_v28, %v1264_v30 }
  0x39   :  { %4271 = vmatpush3.bf16.msra.mxu0 %v4268_v44  ;;  %3929 = vmatprep.mubr.f32.mxu0 %v137_v29  ;;  %v1261_v29 = vand.u32 4294901760, %v1243_v27 }
  0x3a   :  { %4273 = vmatprep.subr.bf16.mxu0 %v4252_v17  ;;  %v1377_v35 = vand.u32 4294901760, %v1376_v33 }
  0x3b   :  { %v4622_v31 = vpack.c.bf16 %v1264_v30, %v1261_v29 }
  0x3c   :  { %3930 = vmatmul.mubr.f32.gmra.mrb[2].mxu0 %v147_v32  ;;  %v1369_v32 = vsub.f32 %v1243_v27, %v1261_v29  ;;  %v1378_v37 = vsub.f32 %v1376_v33, %v1377_v35 }
  0x3d   :  { %3936 = vmatprep.mubr.f32.mxu0 %v4584_v9 }
  0x3e   :  { %v1370_v34 = vand.u32 4294901760, %v1369_v32  ;;  %v1379_v39 = vand.u32 4294901760, %v1378_v37  ;;  %v4308_v41 = vpack.c.bf16 %v1376_v33, %v1369_v32 }
  0x40   :  { %3937 = vmatmul.mubr.f32.vlgmr.msra.gmra.mrb[0].mxu0 %v4591_v13  ;;  %v1371_v36 = vsub.f32 %v1369_v32, %v1370_v34  ;;  %v4316_v42 = vpack.c.bf16 %v1377_v35, %v1370_v34 }
  0x41   :  { %4275 = vmatpush3.bf16.msra.mxu0 %v4252_v17  ;;  %3939 = vmatprep.mubr.f32.mxu0 %v4593_v15 }
  0x42   :  { %4301 = vmatprep.subr.bf16.mxu0 %v4622_v31  ;;  %v1372_v38 = vand.u32 4294901760, %v1371_v36 }
  0x44   :  { %3940 = vmatmul.mubr.f32.gmra.mrb[2].mxu0 %v145_v20  ;;  %v4304_v40 = vpack.c.bf16 %v1379_v39, %v1372_v38 }
  0x45   :  { %3946 = vmatprep.mubr.f32.mxu0 %v4584_v9 }
  0x48   :  { %3947 = vmatmul.mubr.f32.vlgmr.msra.gmra.mrb[0].mxu0 %v4591_v13 }
  0x49   :  { %3949 = vmatprep.mubr.f32.mxu0 %v4593_v15  ;;  %4303 = vmatpush3.bf16.msra.mxu0 %v4622_v31 }
  0x4a   :  { %4305 = vmatprep.subr.bf16.mxu0 %v4304_v40 }
  0x4c   :  { %3950 = vmatmul.mubr.f32.gmra.mrb[2].mxu0 %v145_v20 }
 0x11b   :  { %v3948_v62 = vpop.f32.mrb[0].mxu0 }
 0x11c   :  { %v643_v63 = vsel %vm31_vm1, %v3948_v62, 0  ;;  %v614_v0 = vpop.f32.mrb[1].mxu0 }
 0x11d   :  { %v731_v1 = vand.u32 4294901760, %v643_v63  ;;  %v640_v2 = vsel %vm31_vm1, %v614_v0, 0 }
 0x11e   :  { %v721_v3 = vand.u32 4294901760, %v640_v2 }
 0x11f   :  { %v732_v4 = vsub.f32 %v643_v63, %v731_v1  ;;  %v3951_v5 = vpop.f32.mrb[2].mxu0 }
 0x120   :  { %v722_v6 = vsub.f32 %v640_v2, %v721_v3  ;;  %v649_v7 = vsel %vm31_vm1, %v3951_v5, 0  ;;  %v626_v8 = vpop.f32.mrb[3].mxu0 }
 0x121   :  { %v733_v9 = vand.u32 4294901760, %v732_v4  ;;  %v751_v10 = vand.u32 4294901760, %v649_v7  ;;  %v646_v11 = vsel %vm31_vm1, %v626_v8, 0  ;;  %v1849_v8 = vld [vmem:[#allocation2 + $0x30] sm:$0xff] }
 0x122   :  { %v741_v12 = vand.u32 4294901760, %v646_v11  ;;  %v723_v13 = vand.u32 4294901760, %v722_v6 }
 0x123   :  { %v752_v14 = vsub.f32 %v649_v7, %v751_v10  ;;  %v734_v15 = vsub.f32 %v732_v4, %v733_v9  ;;  %v1850_v7 = vld [vmem:[#allocation2 + $0x38] sm:$0x7f] }
 0x124   :  { %v742_v16 = vsub.f32 %v646_v11, %v741_v12  ;;  %v724_v17 = vsub.f32 %v722_v6, %v723_v13 }
 0x125   :  { %v753_v18 = vand.u32 4294901760, %v752_v14  ;;  %v735_v21 = vand.u32 4294901760, %v734_v15 }
 0x126   :  { %v743_v19 = vand.u32 4294901760, %v742_v16  ;;  %v725_v20 = vand.u32 4294901760, %v724_v17 }
 0x127   :  { %v754_v22 = vsub.f32 %v752_v14, %v753_v18 }
 0x128   :  { %3956 = vmatprep.mubr.f32.mxu1 %v725_v20  ;;  %v744_v23 = vsub.f32 %v742_v16, %v743_v19 }
 0x129   :  { %3957 = vmatmul.mubr.f32.vlgmr.msra.gmra.mrb[0].mxu1 %v735_v21  ;;  %v755_v25 = vand.u32 4294901760, %v754_v22 }
 0x12a   :  { %4283 = vmatpush3.bf16.msra.mxu1 %v4280_v59  ;;  %v745_v24 = vand.u32 4294901760, %v744_v23 }
 0x12b   :  { %4285 = vmatprep.subr.bf16.mxu1 %v4284_v60 }
 0x12c   :  { %3959 = vmatprep.mubr.f32.mxu1 %v745_v24 }
 0x12d   :  { %3960 = vmatmul.mubr.f32.gmra.mrb[2].mxu1 %v755_v25 }
 0x12e   :  { %3966 = vmatprep.mubr.f32.mxu1 %v721_v3 }
 0x131   :  { %3967 = vmatmul.mubr.f32.vlgmr.msra.gmra.mrb[0].mxu1 %v731_v1 }
 0x132   :  { %3969 = vmatprep.mubr.f32.mxu1 %v741_v12  ;;  %4287 = vmatpush3.bf16.msra.mxu1 %v4284_v60 }
 0x133   :  { %4289 = vmatprep.subr.bf16.mxu1 %v4609_v50 }
 0x135   :  { %3970 = vmatmul.mubr.f32.gmra.mrb[2].mxu1 %v751_v10 }
 0x136   :  { %3976 = vmatprep.mubr.f32.mxu1 %v722_v6 }
 0x139   :  { %3977 = vmatmul.mubr.f32.vlgmr.msra.gmra.mrb[0].mxu1 %v732_v4 }
 0x13a   :  { %3979 = vmatprep.mubr.f32.mxu1 %v742_v16  ;;  %4291 = vmatpush3.bf16.msra.mxu1 %v4609_v50 }
 0x13b   :  { %4293 = vmatprep.subr.bf16.mxu1 %v4292_v61 }
 0x13d   :  { %3980 = vmatmul.mubr.f32.gmra.mrb[2].mxu1 %v752_v14 }
 0x13e   :  { %3986 = vmatprep.mubr.f32.mxu1 %v723_v13 }
 0x141   :  { %3987 = vmatmul.mubr.f32.vlgmr.msra.gmra.mrb[0].mxu1 %v733_v9  ;;  %v1864_v9 = vsel %vm44_vm0, %v1850_v7, 0 }
 0x142   :  { %3989 = vmatprep.mubr.f32.mxu1 %v743_v19  ;;  %4295 = vmatpush3.bf16.msra.mxu1 %v4292_v61  ;;  %v1870_v11 = vand.u32 4294901760, %v1864_v9 }
 0x143   :  { %4297 = vmatprep.subr.bf16.mxu1 %v4609_v50 }
 0x144   :  { %v1982_v14 = vsub.f32 %v1864_v9, %v1870_v11 }
 0x145   :  { %3990 = vmatmul.mubr.f32.gmra.mrb[2].mxu1 %v753_v18 }
 0x146   :  { %3996 = vmatprep.mubr.f32.mxu1 %v721_v3  ;;  %v1983_v16 = vand.u32 4294901760, %v1982_v14 }
 0x148   :  { %v1984_v18 = vsub.f32 %v1982_v14, %v1983_v16 }
 0x149   :  { %3997 = vmatmul.mubr.f32.vlgmr.msra.gmra.mrb[0].mxu1 %v731_v1 }
 0x14a   :  { %3999 = vmatprep.mubr.f32.mxu1 %v741_v12  ;;  %4299 = vmatpush3.bf16.msra.mxu1 %v4609_v50  ;;  %v1985_v20 = vand.u32 4294901760, %v1984_v18 }
 0x14d   :  { %4000 = vmatmul.mubr.f32.gmra.mrb[2].mxu1 %v751_v10 }
 0x14e   :  { %4006 = vmatprep.mubr.f32.mxu1 %v721_v3 }
 0x151   :  { %4007 = vmatmul.mubr.f32.vlgmr.msra.gmra.mrb[0].mxu1 %v731_v1 }
 0x152   :  { %4009 = vmatprep.mubr.f32.mxu1 %v741_v12 }
 0x155   :  { %4010 = vmatmul.mubr.f32.gmra.mrb[2].mxu1 %v751_v10  ;;  %v1867_v10 = vand.u32 4294901760, %v1849_v8 }
 0x157   :  { %v4635_v12 = vpack.c.bf16 %v1870_v11, %v1867_v10  ;;  %v1975_v13 = vsub.f32 %v1849_v8, %v1867_v10 }
 0x159   :  { %4325 = vmatprep.subr.bf16.mxu1 %v4635_v12  ;;  %v1976_v15 = vand.u32 4294901760, %v1975_v13  ;;  %v4332_v22 = vpack.c.bf16 %v1982_v14, %v1975_v13 }
 0x15a   :  { %4327 = vmatpush3.bf16.msra.mxu1 %v4635_v12 }
 0x15b   :  { %v1977_v17 = vsub.f32 %v1975_v13, %v1976_v15  ;;  %v4340_v23 = vpack.c.bf16 %v1983_v16, %v1976_v15 }
 0x15d   :  { %v1978_v19 = vand.u32 4294901760, %v1977_v17 }
 0x15f   :  { %v4328_v21 = vpack.c.bf16 %v1985_v20, %v1978_v19 }
 0x161   :  { %4329 = vmatprep.subr.bf16.mxu1 %v4328_v21 }
 0x224   :  { %v4008_v43 = vpop.f32.mrb[0].mxu1 }
 0x225   :  { %v1249_v44 = vsel %vm31_vm1, %v4008_v43, 0  ;;  %v1220_v45 = vpop.f32.mrb[1].mxu1 }
 0x226   :  { %v1337_v46 = vand.u32 4294901760, %v1249_v44  ;;  %v1246_v47 = vsel %vm31_vm1, %v1220_v45, 0 }
 0x227   :  { %v1327_v48 = vand.u32 4294901760, %v1246_v47 }
 0x228   :  { %v1338_v49 = vsub.f32 %v1249_v44, %v1337_v46  ;;  %v4011_v50 = vpop.f32.mrb[2].mxu1 }
 0x229   :  { %v1328_v51 = vsub.f32 %v1246_v47, %v1327_v48  ;;  %v1255_v52 = vsel %vm31_vm1, %v4011_v50, 0  ;;  %v1232_v53 = vpop.f32.mrb[3].mxu1 }
 0x22a   :  { %v1339_v54 = vand.u32 4294901760, %v1338_v49  ;;  %v1357_v55 = vand.u32 4294901760, %v1255_v52  ;;  %v1252_v56 = vsel %vm31_vm1, %v1232_v53, 0  ;;  %v2455_v53 = vld [vmem:[#allocation2 + $0x40] sm:$0xff] }
 0x22b   :  { %v1329_v57 = vand.u32 4294901760, %v1328_v51  ;;  %v1347_v58 = vand.u32 4294901760, %v1252_v56 }
 0x22c   :  { %v1340_v59 = vsub.f32 %v1338_v49, %v1339_v54  ;;  %v1358_v60 = vsub.f32 %v1255_v52, %v1357_v55  ;;  %v2456_v52 = vld [vmem:[#allocation2 + $0x48] sm:$0x7f] }
 0x22d   :  { %v1348_v61 = vsub.f32 %v1252_v56, %v1347_v58  ;;  %v1330_v62 = vsub.f32 %v1328_v51, %v1329_v57 }
 0x22e   :  { %v1359_v63 = vand.u32 4294901760, %v1358_v60  ;;  %v1341_v2 = vand.u32 4294901760, %v1340_v59 }
 0x22f   :  { %v1349_v0 = vand.u32 4294901760, %v1348_v61  ;;  %v1331_v1 = vand.u32 4294901760, %v1330_v62 }
 0x230   :  { %v1360_v3 = vsub.f32 %v1358_v60, %v1359_v63 }
 0x231   :  { %4016 = vmatprep.mubr.f32.mxu0 %v1331_v1  ;;  %v1350_v4 = vsub.f32 %v1348_v61, %v1349_v0 }
 0x232   :  { %4017 = vmatmul.mubr.f32.vlgmr.msra.gmra.mrb[4].mxu0 %v1341_v2  ;;  %v1361_v6 = vand.u32 4294901760, %v1360_v3 }
 0x233   :  { %4307 = vmatpush3.bf16.msra.mxu0 %v4304_v40  ;;  %v1351_v5 = vand.u32 4294901760, %v1350_v4 }
 0x234   :  { %4309 = vmatprep.subr.bf16.mxu0 %v4308_v41 }
 0x235   :  { %4019 = vmatprep.mubr.f32.mxu0 %v1351_v5 }
 0x236   :  { %4020 = vmatmul.mubr.f32.gmra.mrb[6].mxu0 %v1361_v6 }
 0x237   :  { %4026 = vmatprep.mubr.f32.mxu0 %v1327_v48 }
 0x23a   :  { %4027 = vmatmul.mubr.f32.vlgmr.msra.gmra.mrb[4].mxu0 %v1337_v46 }
 0x23b   :  { %4029 = vmatprep.mubr.f32.mxu0 %v1347_v58  ;;  %4311 = vmatpush3.bf16.msra.mxu0 %v4308_v41 }
 0x23c   :  { %4313 = vmatprep.subr.bf16.mxu0 %v4622_v31 }
 0x23e   :  { %4030 = vmatmul.mubr.f32.gmra.mrb[6].mxu0 %v1357_v55 }
 0x23f   :  { %4036 = vmatprep.mubr.f32.mxu0 %v1328_v51 }
 0x242   :  { %4037 = vmatmul.mubr.f32.vlgmr.msra.gmra.mrb[4].mxu0 %v1338_v49 }
 0x243   :  { %4039 = vmatprep.mubr.f32.mxu0 %v1348_v61  ;;  %4315 = vmatpush3.bf16.msra.mxu0 %v4622_v31 }
 0x244   :  { %4317 = vmatprep.subr.bf16.mxu0 %v4316_v42 }
 0x246   :  { %4040 = vmatmul.mubr.f32.gmra.mrb[6].mxu0 %v1358_v60 }
 0x247   :  { %4046 = vmatprep.mubr.f32.mxu0 %v1329_v57 }
 0x24a   :  { %4047 = vmatmul.mubr.f32.vlgmr.msra.gmra.mrb[4].mxu0 %v1339_v54  ;;  %v2470_v54 = vsel %vm44_vm0, %v2456_v52, 0 }
 0x24b   :  { %4049 = vmatprep.mubr.f32.mxu0 %v1349_v0  ;;  %4319 = vmatpush3.bf16.msra.mxu0 %v4316_v42  ;;  %v2476_v56 = vand.u32 4294901760, %v2470_v54 }
 0x24c   :  { %4321 = vmatprep.subr.bf16.mxu0 %v4622_v31 }
 0x24d   :  { %v2588_v59 = vsub.f32 %v2470_v54, %v2476_v56 }
 0x24e   :  { %4050 = vmatmul.mubr.f32.gmra.mrb[6].mxu0 %v1359_v63 }
 0x24f   :  { %4056 = vmatprep.mubr.f32.mxu0 %v1327_v48  ;;  %v2589_v61 = vand.u32 4294901760, %v2588_v59 }
 0x251   :  { %v2590_v63 = vsub.f32 %v2588_v59, %v2589_v61 }
 0x252   :  { %4057 = vmatmul.mubr.f32.vlgmr.msra.gmra.mrb[4].mxu0 %v1337_v46 }
 0x253   :  { %4059 = vmatprep.mubr.f32.mxu0 %v1347_v58  ;;  %4323 = vmatpush3.bf16.msra.mxu0 %v4622_v31  ;;  %v2591_v1 = vand.u32 4294901760, %v2590_v63 }
 0x256   :  { %4060 = vmatmul.mubr.f32.gmra.mrb[6].mxu0 %v1357_v55 }
 0x257   :  { %4066 = vmatprep.mubr.f32.mxu0 %v1327_v48 }
 0x25a   :  { %4067 = vmatmul.mubr.f32.vlgmr.msra.gmra.mrb[4].mxu0 %v1337_v46 }
 0x25b   :  { %4069 = vmatprep.mubr.f32.mxu0 %v1347_v58 }
 0x25e   :  { %4070 = vmatmul.mubr.f32.gmra.mrb[6].mxu0 %v1357_v55  ;;  %v2473_v55 = vand.u32 4294901760, %v2455_v53 }
 0x260   :  { %v4648_v57 = vpack.c.bf16 %v2476_v56, %v2473_v55  ;;  %v2581_v58 = vsub.f32 %v2455_v53, %v2473_v55 }
 0x262   :  { %4349 = vmatprep.subr.bf16.mxu0 %v4648_v57  ;;  %v2582_v60 = vand.u32 4294901760, %v2581_v58  ;;  %v4356_v3 = vpack.c.bf16 %v2588_v59, %v2581_v58 }
 0x263   :  { %4351 = vmatpush3.bf16.msra.mxu0 %v4648_v57 }
 0x264   :  { %v2583_v62 = vsub.f32 %v2581_v58, %v2582_v60  ;;  %v4364_v4 = vpack.c.bf16 %v2589_v61, %v2582_v60 }
 0x266   :  { %v2584_v0 = vand.u32 4294901760, %v2583_v62 }
 0x268   :  { %v4352_v2 = vpack.c.bf16 %v2591_v1, %v2584_v0 }
 0x26a   :  { %4353 = vmatprep.subr.bf16.mxu0 %v4352_v2 }
 0x32d   :  { %v4068_v24 = vpop.f32.mrb[4].mxu0 }
 0x32e   :  { %v1855_v25 = vsel %vm31_vm1, %v4068_v24, 0  ;;  %v1826_v26 = vpop.f32.mrb[5].mxu0 }
 0x32f   :  { %v1943_v27 = vand.u32 4294901760, %v1855_v25  ;;  %v1852_v28 = vsel %vm31_vm1, %v1826_v26, 0 }
 0x330   :  { %v1933_v29 = vand.u32 4294901760, %v1852_v28 }
 0x331   :  { %v1944_v30 = vsub.f32 %v1855_v25, %v1943_v27  ;;  %v4071_v31 = vpop.f32.mrb[6].mxu0 }
 0x332   :  { %v1934_v32 = vsub.f32 %v1852_v28, %v1933_v29  ;;  %v1861_v33 = vsel %vm31_vm1, %v4071_v31, 0  ;;  %v1838_v34 = vpop.f32.mrb[7].mxu0 }
 0x333   :  { %v1945_v35 = vand.u32 4294901760, %v1944_v30  ;;  %v1963_v36 = vand.u32 4294901760, %v1861_v33  ;;  %v1858_v37 = vsel %vm31_vm1, %v1838_v34, 0  ;;  %v3061_v34 = vld [vmem:[#allocation2 + $0x50] sm:$0xff] }
 0x334   :  { %v1935_v38 = vand.u32 4294901760, %v1934_v32  ;;  %v1953_v39 = vand.u32 4294901760, %v1858_v37 }
 0x335   :  { %v1946_v40 = vsub.f32 %v1944_v30, %v1945_v35  ;;  %v1964_v41 = vsub.f32 %v1861_v33, %v1963_v36  ;;  %v3062_v33 = vld [vmem:[#allocation2 + $0x58] sm:$0x7f] }
 0x336   :  { %v1954_v42 = vsub.f32 %v1858_v37, %v1953_v39  ;;  %v1936_v43 = vsub.f32 %v1934_v32, %v1935_v38 }
 0x337   :  { %v1965_v44 = vand.u32 4294901760, %v1964_v41  ;;  %v1947_v47 = vand.u32 4294901760, %v1946_v40 }
 0x338   :  { %v1955_v45 = vand.u32 4294901760, %v1954_v42  ;;  %v1937_v46 = vand.u32 4294901760, %v1936_v43 }
 0x339   :  { %v1966_v48 = vsub.f32 %v1964_v41, %v1965_v44 }
 0x33a   :  { %4076 = vmatprep.mubr.f32.mxu1 %v1937_v46  ;;  %v1956_v49 = vsub.f32 %v1954_v42, %v1955_v45 }
 0x33b   :  { %4077 = vmatmul.mubr.f32.vlgmr.msra.gmra.mrb[4].mxu1 %v1947_v47  ;;  %v1967_v51 = vand.u32 4294901760, %v1966_v48 }
 0x33c   :  { %4331 = vmatpush3.bf16.msra.mxu1 %v4328_v21  ;;  %v1957_v50 = vand.u32 4294901760, %v1956_v49 }
 0x33d   :  { %4333 = vmatprep.subr.bf16.mxu1 %v4332_v22 }
 0x33e   :  { %4079 = vmatprep.mubr.f32.mxu1 %v1957_v50 }
 0x33f   :  { %4080 = vmatmul.mubr.f32.gmra.mrb[6].mxu1 %v1967_v51 }
 0x340   :  { %4086 = vmatprep.mubr.f32.mxu1 %v1933_v29 }
 0x343   :  { %4087 = vmatmul.mubr.f32.vlgmr.msra.gmra.mrb[4].mxu1 %v1943_v27 }
 0x344   :  { %4089 = vmatprep.mubr.f32.mxu1 %v1953_v39  ;;  %4335 = vmatpush3.bf16.msra.mxu1 %v4332_v22 }
 0x345   :  { %4337 = vmatprep.subr.bf16.mxu1 %v4635_v12 }
 0x347   :  { %4090 = vmatmul.mubr.f32.gmra.mrb[6].mxu1 %v1963_v36 }
 0x348   :  { %4096 = vmatprep.mubr.f32.mxu1 %v1934_v32 }
 0x34b   :  { %4097 = vmatmul.mubr.f32.vlgmr.msra.gmra.mrb[4].mxu1 %v1944_v30 }
 0x34c   :  { %4099 = vmatprep.mubr.f32.mxu1 %v1954_v42  ;;  %4339 = vmatpush3.bf16.msra.mxu1 %v4635_v12 }
 0x34d   :  { %4341 = vmatprep.subr.bf16.mxu1 %v4340_v23 }
 0x34f   :  { %4100 = vmatmul.mubr.f32.gmra.mrb[6].mxu1 %v1964_v41 }
 0x350   :  { %4106 = vmatprep.mubr.f32.mxu1 %v1935_v38 }
 0x353   :  { %4107 = vmatmul.mubr.f32.vlgmr.msra.gmra.mrb[4].mxu1 %v1945_v35  ;;  %v3076_v35 = vsel %vm44_vm0, %v3062_v33, 0 }
 0x354   :  { %4109 = vmatprep.mubr.f32.mxu1 %v1955_v45  ;;  %4343 = vmatpush3.bf16.msra.mxu1 %v4340_v23  ;;  %v3082_v37 = vand.u32 4294901760, %v3076_v35 }
 0x355   :  { %4345 = vmatprep.subr.bf16.mxu1 %v4635_v12 }
 0x356   :  { %v3194_v40 = vsub.f32 %v3076_v35, %v3082_v37 }
 0x357   :  { %4110 = vmatmul.mubr.f32.gmra.mrb[6].mxu1 %v1965_v44 }
 0x358   :  { %4116 = vmatprep.mubr.f32.mxu1 %v1933_v29  ;;  %v3195_v42 = vand.u32 4294901760, %v3194_v40 }
 0x35a   :  { %v3196_v44 = vsub.f32 %v3194_v40, %v3195_v42 }
 0x35b   :  { %4117 = vmatmul.mubr.f32.vlgmr.msra.gmra.mrb[4].mxu1 %v1943_v27 }
 0x35c   :  { %4119 = vmatprep.mubr.f32.mxu1 %v1953_v39  ;;  %4347 = vmatpush3.bf16.msra.mxu1 %v4635_v12  ;;  %v3197_v46 = vand.u32 4294901760, %v3196_v44 }
 0x35f   :  { %4120 = vmatmul.mubr.f32.gmra.mrb[6].mxu1 %v1963_v36 }
 0x360   :  { %4126 = vmatprep.mubr.f32.mxu1 %v1933_v29 }
 0x363   :  { %4127 = vmatmul.mubr.f32.vlgmr.msra.gmra.mrb[4].mxu1 %v1943_v27 }
 0x364   :  { %4129 = vmatprep.mubr.f32.mxu1 %v1953_v39 }
 0x367   :  { %4130 = vmatmul.mubr.f32.gmra.mrb[6].mxu1 %v1963_v36  ;;  %v3079_v36 = vand.u32 4294901760, %v3061_v34 }
 0x369   :  { %v4661_v38 = vpack.c.bf16 %v3082_v37, %v3079_v36  ;;  %v3187_v39 = vsub.f32 %v3061_v34, %v3079_v36 }
 0x36b   :  { %4373 = vmatprep.subr.bf16.mxu1 %v4661_v38  ;;  %v3188_v41 = vand.u32 4294901760, %v3187_v39  ;;  %v4380_v48 = vpack.c.bf16 %v3194_v40, %v3187_v39 }
 0x36c   :  { %4375 = vmatpush3.bf16.msra.mxu1 %v4661_v38 }
 0x36d   :  { %v3189_v43 = vsub.f32 %v3187_v39, %v3188_v41  ;;  %v4388_v49 = vpack.c.bf16 %v3195_v42, %v3188_v41 }
 0x36f   :  { %v3190_v45 = vand.u32 4294901760, %v3189_v43 }
 0x371   :  { %v4376_v47 = vpack.c.bf16 %v3197_v46, %v3190_v45 }
 0x373   :  { %4377 = vmatprep.subr.bf16.mxu1 %v4376_v47 }
 0x436   :  { %v4128_v5 = vpop.f32.mrb[4].mxu1 }
 0x437   :  { %v2461_v6 = vsel %vm31_vm1, %v4128_v5, 0  ;;  %v2432_v7 = vpop.f32.mrb[5].mxu1 }
 0x438   :  { %v2549_v8 = vand.u32 4294901760, %v2461_v6  ;;  %v2458_v9 = vsel %vm31_vm1, %v2432_v7, 0 }
 0x439   :  { %v2539_v10 = vand.u32 4294901760, %v2458_v9 }
 0x43a   :  { %v2550_v11 = vsub.f32 %v2461_v6, %v2549_v8  ;;  %v4131_v12 = vpop.f32.mrb[6].mxu1 }
 0x43b   :  { %v2540_v13 = vsub.f32 %v2458_v9, %v2539_v10  ;;  %v2467_v14 = vsel %vm31_vm1, %v4131_v12, 0  ;;  %v2444_v15 = vpop.f32.mrb[7].mxu1 }
 0x43c   :  { %v2551_v16 = vand.u32 4294901760, %v2550_v11  ;;  %v2569_v17 = vand.u32 4294901760, %v2467_v14  ;;  %v2464_v18 = vsel %vm31_vm1, %v2444_v15, 0 }
 0x43d   :  { %v2541_v19 = vand.u32 4294901760, %v2540_v13  ;;  %v2559_v20 = vand.u32 4294901760, %v2464_v18 }
 0x43e   :  { %v2552_v21 = vsub.f32 %v2550_v11, %v2551_v16  ;;  %v2570_v22 = vsub.f32 %v2467_v14, %v2569_v17 }
 0x43f   :  { %v2560_v23 = vsub.f32 %v2464_v18, %v2559_v20  ;;  %v2542_v24 = vsub.f32 %v2540_v13, %v2541_v19 }
 0x440   :  { %v2571_v25 = vand.u32 4294901760, %v2570_v22  ;;  %v2553_v28 = vand.u32 4294901760, %v2552_v21 }
 0x441   :  { %v2561_v26 = vand.u32 4294901760, %v2560_v23  ;;  %v2543_v27 = vand.u32 4294901760, %v2542_v24 }
 0x442   :  { %v2572_v29 = vsub.f32 %v2570_v22, %v2571_v25 }
 0x443   :  { %4136 = vmatprep.mubr.f32.mxu0 %v2543_v27  ;;  %v2562_v30 = vsub.f32 %v2560_v23, %v2561_v26 }
 0x444   :  { %4137 = vmatmul.mubr.f32.vlgmr.msra.gmra.mrb[8].mxu0 %v2553_v28  ;;  %v2573_v32 = vand.u32 4294901760, %v2572_v29 }
 0x445   :  { %4355 = vmatpush3.bf16.msra.mxu0 %v4352_v2  ;;  %v2563_v31 = vand.u32 4294901760, %v2562_v30 }
 0x446   :  { %4357 = vmatprep.subr.bf16.mxu0 %v4356_v3 }
 0x447   :  { %4139 = vmatprep.mubr.f32.mxu0 %v2563_v31 }
 0x448   :  { %4140 = vmatmul.mubr.f32.gmra.mrb[10].mxu0 %v2573_v32 }
 0x449   :  { %4146 = vmatprep.mubr.f32.mxu0 %v2539_v10 }
 0x44c   :  { %4147 = vmatmul.mubr.f32.vlgmr.msra.gmra.mrb[8].mxu0 %v2549_v8 }
 0x44d   :  { %4149 = vmatprep.mubr.f32.mxu0 %v2559_v20  ;;  %4359 = vmatpush3.bf16.msra.mxu0 %v4356_v3 }
 0x44e   :  { %4361 = vmatprep.subr.bf16.mxu0 %v4648_v57 }
 0x450   :  { %4150 = vmatmul.mubr.f32.gmra.mrb[10].mxu0 %v2569_v17 }
 0x451   :  { %4156 = vmatprep.mubr.f32.mxu0 %v2540_v13 }
 0x454   :  { %4157 = vmatmul.mubr.f32.vlgmr.msra.gmra.mrb[8].mxu0 %v2550_v11 }
 0x455   :  { %4159 = vmatprep.mubr.f32.mxu0 %v2560_v23  ;;  %4363 = vmatpush3.bf16.msra.mxu0 %v4648_v57 }
 0x456   :  { %4365 = vmatprep.subr.bf16.mxu0 %v4364_v4 }
 0x458   :  { %4160 = vmatmul.mubr.f32.gmra.mrb[10].mxu0 %v2570_v22 }
 0x459   :  { %4166 = vmatprep.mubr.f32.mxu0 %v2541_v19 }
 0x45c   :  { %4167 = vmatmul.mubr.f32.vlgmr.msra.gmra.mrb[8].mxu0 %v2551_v16 }
 0x45d   :  { %4169 = vmatprep.mubr.f32.mxu0 %v2561_v26  ;;  %4367 = vmatpush3.bf16.msra.mxu0 %v4364_v4 }
 0x45e   :  { %4369 = vmatprep.subr.bf16.mxu0 %v4648_v57 }
 0x460   :  { %4170 = vmatmul.mubr.f32.gmra.mrb[10].mxu0 %v2571_v25 }
 0x461   :  { %4176 = vmatprep.mubr.f32.mxu0 %v2539_v10 }
 0x464   :  { %4177 = vmatmul.mubr.f32.vlgmr.msra.gmra.mrb[8].mxu0 %v2549_v8 }
 0x465   :  { %4179 = vmatprep.mubr.f32.mxu0 %v2559_v20  ;;  %4371 = vmatpush3.bf16.msra.mxu0 %v4648_v57 }
 0x468   :  { %4180 = vmatmul.mubr.f32.gmra.mrb[10].mxu0 %v2569_v17 }
 0x469   :  { %4186 = vmatprep.mubr.f32.mxu0 %v2539_v10 }
 0x46c   :  { %4187 = vmatmul.mubr.f32.vlgmr.msra.gmra.mrb[8].mxu0 %v2549_v8 }
 0x46d   :  { %4189 = vmatprep.mubr.f32.mxu0 %v2559_v20 }
 0x470   :  { %4190 = vmatmul.mubr.f32.gmra.mrb[10].mxu0 %v2569_v17 }
 0x53f   :  { %v4188_v50 = vpop.f32.mrb[8].mxu0 }
 0x540   :  { %v3067_v51 = vsel %vm31_vm1, %v4188_v50, 0  ;;  %v3038_v52 = vpop.f32.mrb[9].mxu0 }
 0x541   :  { %v3155_v53 = vand.u32 4294901760, %v3067_v51  ;;  %v3064_v54 = vsel %vm31_vm1, %v3038_v52, 0 }
 0x542   :  { %v3145_v55 = vand.u32 4294901760, %v3064_v54 }
 0x543   :  { %v3156_v56 = vsub.f32 %v3067_v51, %v3155_v53  ;;  %v4191_v57 = vpop.f32.mrb[10].mxu0 }
 0x544   :  { %v3146_v58 = vsub.f32 %v3064_v54, %v3145_v55  ;;  %v3073_v59 = vsel %vm31_vm1, %v4191_v57, 0  ;;  %v3050_v60 = vpop.f32.mrb[11].mxu0 }
 0x545   :  { %v3157_v61 = vand.u32 4294901760, %v3156_v56  ;;  %v3175_v62 = vand.u32 4294901760, %v3073_v59  ;;  %v3070_v63 = vsel %vm31_vm1, %v3050_v60, 0 }
 0x546   :  { %v3147_v0 = vand.u32 4294901760, %v3146_v58  ;;  %v3165_v1 = vand.u32 4294901760, %v3070_v63 }
 0x547   :  { %v3158_v2 = vsub.f32 %v3156_v56, %v3157_v61  ;;  %v3176_v3 = vsub.f32 %v3073_v59, %v3175_v62 }
 0x548   :  { %v3166_v4 = vsub.f32 %v3070_v63, %v3165_v1  ;;  %v3148_v5 = vsub.f32 %v3146_v58, %v3147_v0 }
 0x549   :  { %v3177_v6 = vand.u32 4294901760, %v3176_v3  ;;  %v3159_v9 = vand.u32 4294901760, %v3158_v2 }
 0x54a   :  { %v3167_v7 = vand.u32 4294901760, %v3166_v4  ;;  %v3149_v8 = vand.u32 4294901760, %v3148_v5 }
 0x54b   :  { %v3178_v10 = vsub.f32 %v3176_v3, %v3177_v6 }
 0x54c   :  { %4196 = vmatprep.mubr.f32.mxu1 %v3149_v8  ;;  %v3168_v11 = vsub.f32 %v3166_v4, %v3167_v7 }
 0x54d   :  { %4197 = vmatmul.mubr.f32.vlgmr.msra.gmra.mrb[8].mxu1 %v3159_v9  ;;  %v3179_v13 = vand.u32 4294901760, %v3178_v10 }
 0x54e   :  { %4379 = vmatpush3.bf16.msra.mxu1 %v4376_v47  ;;  %v3169_v12 = vand.u32 4294901760, %v3168_v11 }
 0x54f   :  { %4381 = vmatprep.subr.bf16.mxu1 %v4380_v48 }
 0x550   :  { %4199 = vmatprep.mubr.f32.mxu1 %v3169_v12 }
 0x551   :  { %4200 = vmatmul.mubr.f32.gmra.mrb[10].mxu1 %v3179_v13 }
 0x552   :  { %4206 = vmatprep.mubr.f32.mxu1 %v3145_v55 }
 0x555   :  { %4207 = vmatmul.mubr.f32.vlgmr.msra.gmra.mrb[8].mxu1 %v3155_v53 }
 0x556   :  { %4209 = vmatprep.mubr.f32.mxu1 %v3165_v1  ;;  %4383 = vmatpush3.bf16.msra.mxu1 %v4380_v48 }
 0x557   :  { %4385 = vmatprep.subr.bf16.mxu1 %v4661_v38 }
 0x559   :  { %4210 = vmatmul.mubr.f32.gmra.mrb[10].mxu1 %v3175_v62 }
 0x55a   :  { %4216 = vmatprep.mubr.f32.mxu1 %v3146_v58 }
 0x55d   :  { %4217 = vmatmul.mubr.f32.vlgmr.msra.gmra.mrb[8].mxu1 %v3156_v56 }
 0x55e   :  { %4219 = vmatprep.mubr.f32.mxu1 %v3166_v4  ;;  %4387 = vmatpush3.bf16.msra.mxu1 %v4661_v38 }
 0x55f   :  { %4389 = vmatprep.subr.bf16.mxu1 %v4388_v49 }
 0x561   :  { %4220 = vmatmul.mubr.f32.gmra.mrb[10].mxu1 %v3176_v3 }
 0x562   :  { %4226 = vmatprep.mubr.f32.mxu1 %v3147_v0 }
 0x565   :  { %4227 = vmatmul.mubr.f32.vlgmr.msra.gmra.mrb[8].mxu1 %v3157_v61 }
 0x566   :  { %4229 = vmatprep.mubr.f32.mxu1 %v3167_v7  ;;  %4391 = vmatpush3.bf16.msra.mxu1 %v4388_v49 }
 0x567   :  { %4393 = vmatprep.subr.bf16.mxu1 %v4661_v38 }
 0x569   :  { %4230 = vmatmul.mubr.f32.gmra.mrb[10].mxu1 %v3177_v6 }
 0x56a   :  { %4236 = vmatprep.mubr.f32.mxu1 %v3145_v55 }
 0x56d   :  { %4237 = vmatmul.mubr.f32.vlgmr.msra.gmra.mrb[8].mxu1 %v3155_v53 }
 0x56e   :  { %4239 = vmatprep.mubr.f32.mxu1 %v3165_v1  ;;  %4395 = vmatpush3.bf16.msra.mxu1 %v4661_v38 }
 0x571   :  { %4240 = vmatmul.mubr.f32.gmra.mrb[10].mxu1 %v3175_v62 }
 0x572   :  { %4246 = vmatprep.mubr.f32.mxu1 %v3145_v55 }
 0x575   :  { %4247 = vmatmul.mubr.f32.vlgmr.msra.gmra.mrb[8].mxu1 %v3155_v53 }
 0x576   :  { %4249 = vmatprep.mubr.f32.mxu1 %v3165_v1 }
 0x579   :  { %4250 = vmatmul.mubr.f32.gmra.mrb[10].mxu1 %v3175_v62 }
 0x648   :  { %v4248_v14 = vpop.f32.mrb[8].mxu1 }
 0x649   :  { %3667 = vst.msk [vmem:[%s4690_s2 + $0x8] sm:$0xff] %vm31_vm1, %v4248_v14  ;;  %v3644_v15 = vpop.f32.mrb[9].mxu1 }
 0x64a   :  { %3666 = vst.msk [vmem:[%s4690_s2] sm:$0xff] %vm31_vm1, %v3644_v15 }
 0x64c   :  { %v4251_v16 = vpop.f32.mrb[10].mxu1 }
 0x64d   :  { %3670 = vst.msk [vmem:[%s4690_s2 + $0x18] sm:$0x3f] %vm3669_vm2, %v4251_v16  ;;  %v3656_v17 = vpop.f32.mrb[11].mxu1 }
 0x64e   :  { %3668 = vst.msk [vmem:[%s4690_s2 + $0x10] sm:$0xff] %vm31_vm1, %v3656_v17 }
 0x64f   :  { %3675 = vsyncpa [#allocation3], 1 }

</bundles_post_ra>
